<compile_context>
chip_gen: v7x
topology: tpu7x:2x2x1
jax: 0.10.0
libtpu: 0.0.40
codegen_flags: <defaults>
</compile_context>

<pallas_src>
import jax
import jax.numpy as jnp
from jax.experimental import pallas as pl
from jax.experimental.pallas import tpu as pltpu


def _round_up(v, m):
    return ((v + m - 1) // m) * m


# ----------------------------------------------------------------------------
# Pallas kernels
# ----------------------------------------------------------------------------
def _make_proj_kernel(tk, x_resident):
    """out = (A @ x) @ W + b ; A@x accumulated over the k grid axis."""

    def kernel(nz_ref, fk_ref, a_ref, x_ref, w_ref, b_ref, o_ref, acc_ref):
        i = pl.program_id(0)
        k = pl.program_id(1)

        @pl.when(k == 0)
        def _():
            acc_ref[...] = jnp.zeros_like(acc_ref)

        @pl.when(nz_ref[i, k] != 0)          # skip MXU work for empty A blocks
        def _():
            if x_resident:
                start = pl.multiple_of(k * tk, tk)
                xb = x_ref[pl.ds(start, tk), :]
            else:
                xb = x_ref[...]
            acc_ref[...] += jnp.dot(a_ref[...], xb,
                                    preferred_element_type=jnp.float32)

        @pl.when(k == pl.num_programs(1) - 1)
        def _():
            # epilogue dot in bf16 (inputs were already bf16-rounded), f32 acc
            out = jnp.dot(acc_ref[...].astype(w_ref.dtype), w_ref[...],
                          preferred_element_type=jnp.float32)
            o_ref[...] = (out + b_ref[...]).astype(o_ref.dtype)

    return kernel


def _make_noproj_kernel(tk, x_resident):
    """out = A @ (x @ W) + b ; accumulates directly into the resident f32 o_ref."""

    def kernel(nz_ref, fk_ref, a_ref, xw_ref, b_ref, o_ref):
        i = pl.program_id(0)
        k = pl.program_id(1)

        @pl.when(k == 0)
        def _():
            o_ref[...] = jnp.zeros_like(o_ref)

        @pl.when(nz_ref[i, k] != 0)
        def _():
            if x_resident:
                start = pl.multiple_of(k * tk, tk)
                xwb = xw_ref[pl.ds(start, tk), :]
            else:
                xwb = xw_ref[...]
            o_ref[...] += jnp.dot(a_ref[...], xwb,
                                  preferred_element_type=jnp.float32)

        @pl.when(k == pl.num_programs(1) - 1)
        def _():
            o_ref[...] = o_ref[...] + b_ref[...]

    return kernel


# ----------------------------------------------------------------------------
# Reference adjacency (unpadded, f32) — used only for the correctness check
# ----------------------------------------------------------------------------
def build_dist_adj(edge_index, dist_vec, num_nodes):
    row, col = edge_index[0], edge_index[1]
    deg = jnp.zeros((num_nodes,), jnp.float32).at[col].add(1.0)
    deg_inv_sqrt = jnp.where(
        deg > 0.0, jax.lax.rsqrt(jnp.where(deg > 0.0, deg, 1.0)), 0.0)
    norm = deg_inv_sqrt[row] * deg_inv_sqrt[col]
    vals = jnp.exp(-dist_vec.astype(jnp.float32) ** 2) * norm
    return jnp.zeros((num_nodes, num_nodes), jnp.float32).at[row, col].add(vals)


# ----------------------------------------------------------------------------
# Forward wrapper: tiling, padding, block-sparse metadata, pallas_call
# ----------------------------------------------------------------------------
def geo_gcn_forward(x, edge_index, dist_vec, w_t, bias, *,
                    block_m=None, block_k=None, resident_rhs=None):
    f32, bf16 = jnp.float32, jnp.bfloat16
    n, c_in = x.shape
    c_out = w_t.shape[1]

    # --- tile selection ------------------------------------------------------
    n_pad0 = _round_up(n, 128)
    tk = int(block_k) if block_k is not None else min(512, n_pad0)
    if block_m is not None:
        tm = int(block_m)
    else:
        tm = min(1024, n_pad0)
        if n_pad0 >= 256:
            # v7x megacore: prefer >= 2 row tiles so the "parallel" axis shards
            # across both TensorCores (no effect on single-TC v5e/v6e).
            tm_half = _round_up(n_pad0 // 2, 128)
            if tm_half % tk == 0 or tk % tm_half == 0:
                tm = min(tm, tm_half)
        if not (tm % tk == 0 or tk % tm == 0):
            tm = tk
    assert tm % 16 == 0, "row tile must be a multiple of 16 (bf16 sublane packing)"
    assert tk % 128 == 0, "k tile must be a multiple of 128 (lane width)"
    assert tm % tk == 0 or tk % tm == 0, "tm/tk must nest (avoid lcm over-padding)"

    n_pad = _round_up(n_pad0, max(tm, tk))
    c_in_pad = _round_up(c_in, 128)
    c_out_pad = _round_up(c_out, 128)
    gm, gk = n_pad // tm, n_pad // tk

    # --- normalized adjacency, scattered directly into the padded buffer -----
    row, col = edge_index[0], edge_index[1]
    deg = jnp.zeros((n,), f32).at[col].add(1.0)
    deg_inv_sqrt = jnp.where(
        deg > 0.0, jax.lax.rsqrt(jnp.where(deg > 0.0, deg, 1.0)), 0.0)
    norm = deg_inv_sqrt[row] * deg_inv_sqrt[col]
    vals = jnp.exp(-dist_vec.astype(f32) ** 2) * norm          # f32 duplicate-sum
    adj_p = (jnp.zeros((n_pad, n_pad), f32).at[row, col].add(vals)).astype(bf16)

    # --- block-sparse metadata (O(E), scalar-prefetched into SMEM) -----------
    blk_cnt = jnp.zeros((gm, gk), jnp.int32).at[row // tm, col // tk].add(1)
    nz = (blk_cnt > 0).astype(jnp.int32)                        # (gm, gk)
    karange = jnp.arange(gk, dtype=jnp.int32)[None, :]
    last_nz = jax.lax.cummax(jnp.where(nz > 0, karange, -1), axis=1)
    fetch_k = jnp.where(last_nz >= 0, last_nz, 0).astype(jnp.int32)  # (gm, gk)

    # --- padded, bf16-streamed operands (f32 accumulation in kernel) ---------
    bias_p = jnp.pad(bias.astype(f32).reshape(1, c_out),
                     ((0, 0), (0, c_out_pad - c_out)))

    if c_out < c_in:
        # Smaller inner dim: project first (outside the N^2 loop), A @ (xW).
        acc_cols = c_out_pad
        xw = x.astype(f32) @ w_t.astype(f32)
        rhs = jnp.pad(xw, ((0, n_pad - n),
                           (0, c_out_pad - c_out))).astype(bf16)
        extra_inputs, extra_specs, scratch_shapes = (), [], []
        out_dtype = f32                       # direct f32 accumulation in o_ref
        make_kernel = _make_noproj_kernel
        flops = 2 * n_pad * n_pad * acc_cols
    else:
        acc_cols = c_in_pad
        rhs = jnp.pad(x.astype(f32), ((0, n_pad - n),
                                      (0, c_in_pad - c_in))).astype(bf16)
        w_p = jnp.pad(w_t.astype(f32), ((0, c_in_pad - c_in),
                                        (0, c_out_pad - c_out))).astype(bf16)
        extra_inputs = (w_p,)
        extra_specs = [pl.BlockSpec((c_in_pad, c_out_pad), lambda i, k, *_: (0, 0))]
        scratch_shapes = [pltpu.VMEM((tm, acc_cols), f32)]
        out_dtype = x.dtype
        make_kernel = _make_proj_kernel
        flops = 2 * n_pad * n_pad * acc_cols + 2 * n_pad * c_in_pad * c_out_pad

    # --- keep x / xW fully VMEM-resident when it fits -------------------------
    rhs_bytes = n_pad * acc_cols * 2
    if resident_rhs is None:
        x_resident = rhs_bytes <= 16 * 1024 * 1024   # safe even on v7x (64 MiB)
    else:
        x_resident = bool(resident_rhs)

    if x_resident:
        rhs_spec = pl.BlockSpec((n_pad, acc_cols), lambda i, k, *_: (0, 0))
    else:
        rhs_spec = pl.BlockSpec((tk, acc_cols), lambda i, k, *_: (k, 0))

    # A: data-dependent column block — repeat the previous nonzero block index
    # for empty tiles so the pipeline elides the (zero) HBM DMA.
    a_spec = pl.BlockSpec((tm, tk), lambda i, k, nz_ref, fk_ref: (i, fk_ref[i, k]))
    b_spec = pl.BlockSpec((1, c_out_pad), lambda i, k, *_: (0, 0))
    out_spec = pl.BlockSpec((tm, c_out_pad), lambda i, k, *_: (i, 0))

    bytes_accessed = (2 * n_pad * n_pad            # A stream (bf16)
                      + 2 * n_pad * acc_cols       # rhs (resident: one pass)
                      + 4 * n_pad * c_out_pad)     # output writeback

    out_padded = pl.pallas_call(
        make_kernel(tk, x_resident),
        out_shape=jax.ShapeDtypeStruct((n_pad, c_out_pad), out_dtype),
        grid_spec=pltpu.PrefetchScalarGridSpec(
            num_scalar_prefetch=2,
            grid=(gm, gk),
            in_specs=[a_spec, rhs_spec, *extra_specs, b_spec],
            out_specs=out_spec,
            scratch_shapes=scratch_shapes,
        ),
        compiler_params=pltpu.CompilerParams(
            dimension_semantics=("parallel", "arbitrary"),
            vmem_limit_bytes=48 * 1024 * 1024,
        ),
        cost_estimate=pl.CostEstimate(
            flops=int(flops), transcendentals=0,
            bytes_accessed=int(bytes_accessed)),
    )(nz, fetch_k, adj_p, rhs, *extra_inputs, bias_p)

    return out_padded[:n, :c_out].astype(x.dtype)


# ----------------------------------------------------------------------------
# Main
# ----------------------------------------------------------------------------
if __name__ == "__main__":
    key = jax.random.PRNGKey(0)

    def make_case(k, n, e, c_in, c_out):
        k_x, k_ei, k_d, k_w, k_b = jax.random.split(k, 5)
        x = jax.random.normal(k_x, (n, c_in), dtype=jnp.float32)
        edge_index = jax.random.randint(k_ei, (2, e), 0, n, dtype=jnp.int32)
        dist_vec = jax.random.uniform(k_d, (e,), dtype=jnp.float32)
        xb = (6.0 / (c_in + c_out)) ** 0.5           # xavier_uniform_
        w = jax.random.uniform(k_w, (c_out, c_in), jnp.float32,
                               minval=-xb, maxval=xb)
        bb = 1.0 / (c_in ** 0.5)                      # Linear default bias init
        b = jax.random.uniform(k_b, (c_out,), jnp.float32,
                               minval=-bb, maxval=bb)
        return x, edge_index, dist_vec, w.T, b        # w_t is [c_in, c_out]

    def check(out, x, edge_index, dist_vec, w_t, b):
        n, c_out = x.shape[0], w_t.shape[1]
        adj = build_dist_adj(edge_index, dist_vec, n)
        ref = (adj @ x.astype(jnp.float32)) @ w_t.astype(jnp.float32) + b[None, :]
        assert out.shape == (n, c_out)
        rel = float(jnp.linalg.norm(out.astype(jnp.float32) - ref)
                    / (jnp.linalg.norm(ref) + 1e-12))
        assert rel < 3e-2, f"kernel mismatch vs f32 reference: rel={rel}"

    k1, k2 = jax.random.split(key)

    # case 1: C_in <= C_out -> (A @ x) @ W path, 2x2 block grid, resident x
    x, ei, dv, w_t, b = make_case(k1, n=200, e=800, c_in=8, c_out=16)
    out = jax.block_until_ready(
        geo_gcn_forward(x, ei, dv, w_t, b, block_m=128, block_k=128))
    check(out, x, ei, dv, w_t, b)

    # case 1b: same inputs, streamed (non-resident) rhs fallback path
    out1b = jax.block_until_ready(
        geo_gcn_forward(x, ei, dv, w_t, b, block_m=128, block_k=128,
                        resident_rhs=False))
    check(out1b, x, ei, dv, w_t, b)

    # case 2: C_out < C_in -> A @ (x @ W) path, auto tiles, direct o_ref accum
    x2, ei2, dv2, w_t2, b2 = make_case(k2, n=96, e=400, c_in=32, c_out=8)
    out2 = jax.block_until_ready(geo_gcn_forward(x2, ei2, dv2, w_t2, b2))
    check(out2, x2, ei2, dv2, w_t2, b2)

    print("KERNEL_OK")
</pallas_src>

<mosaic_0001>
module attributes {stable_mosaic.version = 11 : i64} {
  func.func @kernel(%arg0: i32, %arg1: i32, %arg2: memref<2x2xi32, #tpu.memory_space<smem>>, %arg3: memref<2x2xi32, #tpu.memory_space<smem>>, %arg4: memref<128x128xbf16, #tpu.memory_space<vmem>>, %arg5: memref<256x128xbf16, #tpu.memory_space<vmem>>, %arg6: memref<128x128xbf16, #tpu.memory_space<vmem>>, %arg7: memref<1x128xf32, #tpu.memory_space<vmem>>, %arg8: memref<128x128xf32, #tpu.memory_space<vmem>>, %arg9: memref<128x128xf32, #tpu.memory_space<vmem>>) attributes {dimension_semantics = [#tpu.dimension_semantics<parallel>, #tpu.dimension_semantics<arbitrary>], iteration_bounds = array<i64: 2, 2>, scalar_prefetch = 2 : i64, scratch_operands = 1 : i64, tpu.core_type = #tpu.core_type<tc>, window_params = [{transform_indices = @transform_0, window_bounds = array<i64: 128, 128>}, {pipeline_mode = #tpu.pipeline_mode<synchronous>, transform_indices = @transform_1, window_bounds = array<i64: 256, 128>}, {pipeline_mode = #tpu.pipeline_mode<synchronous>, transform_indices = @transform_2, window_bounds = array<i64: 128, 128>}, {pipeline_mode = #tpu.pipeline_mode<synchronous>, transform_indices = @transform_3, window_bounds = array<i64: 1, 128>}, {transform_indices = @transform_4, window_bounds = array<i64: 128, 128>}]} {
    %c0_i32 = arith.constant 0 : i32
    %0 = arith.cmpi eq, %arg1, %c0_i32 : i32
    %1 = arith.extui %0 : i1 to i32
    %c0_i32_0 = arith.constant 0 : i32
    %2 = arith.cmpi ne, %1, %c0_i32_0 : i32
    scf.if %2 {
      %cst = arith.constant 0.000000e+00 : f32
      %12 = vector.broadcast %cst : f32 to vector<128x128xf32>
      %c0 = arith.constant 0 : index
      %c0_4 = arith.constant 0 : index
      %13 = vector.load %arg9[%c0, %c0_4] : memref<128x128xf32, #tpu.memory_space<vmem>>, vector<128x128xf32>
      tpu.vector_store %arg9[%c0, %c0_4], %12 {strides = array<i32>} : memref<128x128xf32, #tpu.memory_space<vmem>>, vector<128x128xf32>,
    } else {
    }
    %3 = arith.index_cast %arg0 : i32 to index
    %4 = arith.index_cast %arg1 : i32 to index
    %5 = memref.load %arg2[%3, %4] : memref<2x2xi32, #tpu.memory_space<smem>>
    %c0_i32_1 = arith.constant 0 : i32
    %6 = arith.cmpi ne, %5, %c0_i32_1 : i32
    %7 = arith.extui %6 : i1 to i32
    %c0_i32_2 = arith.constant 0 : i32
    %8 = arith.cmpi ne, %7, %c0_i32_2 : i32
    scf.if %8 {
      %c128_i32 = arith.constant 128 : i32
      %12 = arith.muli %arg1, %c128_i32 : i32
      %13 = tpu.assume_multiple %12, 128 : i32
      %14 = arith.index_cast %13 : i32 to index
      %c0 = arith.constant 0 : index
      %15 = vector.load %arg5[%14, %c0] : memref<256x128xbf16, #tpu.memory_space<vmem>>, vector<128x128xbf16>
      %c0_4 = arith.constant 0 : index
      %c0_5 = arith.constant 0 : index
      %16 = vector.load %arg9[%c0_4, %c0_5] : memref<128x128xf32, #tpu.memory_space<vmem>>, vector<128x128xf32>
      %c0_6 = arith.constant 0 : index
      %c0_7 = arith.constant 0 : index
      %17 = vector.load %arg4[%c0_6, %c0_7] : memref<128x128xbf16, #tpu.memory_space<vmem>>, vector<128x128xbf16>
      %cst = arith.constant dense<0.000000e+00> : vector<128x128xf32>
      %18 = tpu.matmul %17, %15, %cst {dimension_numbers = #tpu.dot_dimension_numbers<[1], [0], [0], [1], [0, 0, 1, 1], [], []>} : vector<128x128xbf16>, vector<128x128xbf16>, vector<128x128xf32> -> vector<128x128xf32>
      %19 = arith.addf %16, %18 : vector<128x128xf32>
      %c0_8 = arith.constant 0 : index
      %c0_9 = arith.constant 0 : index
      %20 = vector.load %arg9[%c0_8, %c0_9] : memref<128x128xf32, #tpu.memory_space<vmem>>, vector<128x128xf32>
      tpu.vector_store %arg9[%c0_8, %c0_9], %19 {strides = array<i32>} : memref<128x128xf32, #tpu.memory_space<vmem>>, vector<128x128xf32>,
    } else {
    }
    %c1_i32 = arith.constant 1 : i32
    %9 = arith.cmpi eq, %arg1, %c1_i32 : i32
    %10 = arith.extui %9 : i1 to i32
    %c0_i32_3 = arith.constant 0 : i32
    %11 = arith.cmpi ne, %10, %c0_i32_3 : i32
    scf.if %11 {
      %c0 = arith.constant 0 : index
      %c0_4 = arith.constant 0 : index
      %12 = vector.load %arg9[%c0, %c0_4] : memref<128x128xf32, #tpu.memory_space<vmem>>, vector<128x128xf32>
      %13 = arith.truncf %12 : vector<128x128xf32> to vector<128x128xbf16>
      %c0_5 = arith.constant 0 : index
      %c0_6 = arith.constant 0 : index
      %14 = vector.load %arg6[%c0_5, %c0_6] : memref<128x128xbf16, #tpu.memory_space<vmem>>, vector<128x128xbf16>
      %cst = arith.constant dense<0.000000e+00> : vector<128x128xf32>
      %15 = tpu.matmul %13, %14, %cst {dimension_numbers = #tpu.dot_dimension_numbers<[1], [0], [0], [1], [0, 0, 1, 1], [], []>} : vector<128x128xbf16>, vector<128x128xbf16>, vector<128x128xf32> -> vector<128x128xf32>
      %c0_7 = arith.constant 0 : index
      %c0_8 = arith.constant 0 : index
      %16 = vector.load %arg7[%c0_7, %c0_8] : memref<1x128xf32, #tpu.memory_space<vmem>>, vector<1x128xf32>
      %17 = vector.broadcast %16 : vector<1x128xf32> to vector<128x128xf32>
      %18 = arith.addf %15, %17 : vector<128x128xf32>
      %c0_9 = arith.constant 0 : index
      %c0_10 = arith.constant 0 : index
      %19 = vector.load %arg8[%c0_9, %c0_10] : memref<128x128xf32, #tpu.memory_space<vmem>>, vector<128x128xf32>
      tpu.vector_store %arg8[%c0_9, %c0_10], %18 {strides = array<i32>} : memref<128x128xf32, #tpu.memory_space<vmem>>, vector<128x128xf32>,
    } else {
    }
    return
  }
  func.func @transform_0(%arg0: i32, %arg1: i32, %arg2: memref<2x2xi32, #tpu.memory_space<smem>>, %arg3: memref<2x2xi32, #tpu.memory_space<smem>>) -> (i32, i32) {
    %0 = arith.index_cast %arg0 : i32 to index
    %1 = arith.index_cast %arg1 : i32 to index
    %2 = memref.load %arg3[%0, %1] : memref<2x2xi32, #tpu.memory_space<smem>>
    %c0_i32 = arith.constant 0 : i32
    return %arg0, %2 : i32, i32
  }
  func.func @transform_1(%arg0: i32, %arg1: i32, %arg2: memref<2x2xi32, #tpu.memory_space<smem>>, %arg3: memref<2x2xi32, #tpu.memory_space<smem>>) -> (i32, i32) {
    %c0_i32 = arith.constant 0 : i32
    %c0_i32_0 = arith.constant 0 : i32
    %c0_i32_1 = arith.constant 0 : i32
    return %c0_i32, %c0_i32_0 : i32, i32
  }
  func.func @transform_2(%arg0: i32, %arg1: i32, %arg2: memref<2x2xi32, #tpu.memory_space<smem>>, %arg3: memref<2x2xi32, #tpu.memory_space<smem>>) -> (i32, i32) {
    %c0_i32 = arith.constant 0 : i32
    %c0_i32_0 = arith.constant 0 : i32
    %c0_i32_1 = arith.constant 0 : i32
    return %c0_i32, %c0_i32_0 : i32, i32
  }
  func.func @transform_3(%arg0: i32, %arg1: i32, %arg2: memref<2x2xi32, #tpu.memory_space<smem>>, %arg3: memref<2x2xi32, #tpu.memory_space<smem>>) -> (i32, i32) {
    %c0_i32 = arith.constant 0 : i32
    %c0_i32_0 = arith.constant 0 : i32
    %c0_i32_1 = arith.constant 0 : i32
    return %c0_i32, %c0_i32_0 : i32, i32
  }
  func.func @transform_4(%arg0: i32, %arg1: i32, %arg2: memref<2x2xi32, #tpu.memory_space<smem>>, %arg3: memref<2x2xi32, #tpu.memory_space<smem>>) -> (i32, i32) {
    %c0_i32 = arith.constant 0 : i32
    %c0_i32_0 = arith.constant 0 : i32
    return %arg0, %c0_i32 : i32, i32
  }
}

</mosaic_0001>

<bundles_post_ra>
// kernel: tpu_custom_call.1
= control target key start
LH: loop header
LB: loop body
LE: loop exit
PB: predicated region body
PF: predicated region fallthrough
CT: control target
= control target key end

     0   :  { %s1954_s0 = inlined_call_operand.hbm [shape: s32[2,2], index: 0, kind: input, shape index: {}]   ;;  %s1955_s2 = inlined_call_operand.hbm [shape: bf16[256,256], index: 2, kind: input, shape index: {}]   ;;  %s1956_s3 = inlined_call_operand.hbm [shape: bf16[256,128], index: 3, kind: input, shape index: {}]   ;;  %s1957_s4 = inlined_call_operand.hbm [shape: bf16[128,128], index: 4, kind: input, shape index: {}]   ;;  %s1958_s5 = inlined_call_operand.vmem [shape: f32[1,128], index: 5, kind: input, shape index: {}]   ;;  %s1959_s6 = inlined_call_operand.hbm [shape: f32[256,128], index: 6, kind: output, shape index: {}]   ;;  %s1960_s1 = inlined_call_operand.vmem [shape: s32[2,2], index: 1, kind: input, shape index: {}]  }
   0x1   :  { %1981 = sst [smem:[#allocation28_spill]] %s1956_s3  ;;  %s1292_s23 = scalar_lea.hbm %s1954_s0, 32 }
   0x2   :  { %1982 = sst [smem:[#allocation29_spill]] %s1957_s4  ;;  %p1293_p0 = scmp.ne.s32.totalorder %s1954_s0, %s1292_s23 }
   0x3   :  { %1983 = sst [smem:[#allocation30_spill]] %s1958_s5  ;;  %p1296_p1 = scmp.lt.u32.totalorder %s1292_s23, %s1954_s0 }
   0x4   :  { %1984 = sst [smem:[#allocation31_spill]] %s1959_s6 }
   0x5   :  { %p1298_p2 = pnand %p1296_p1, %p1293_p0 }
   0x7   :  { %1301 = shalt.err (!%p1298_p2)  }
   0x8   :  { %s1530_s28 = smov [#allocation4]   ;;  %s13_s9 = sshll.u32 %s1960_s1, 4  ;;  %s14_s9 = int_to_ptr.vmem [resolvable:$true] %s13_s9 }
   0x9   :  { %12 = dma.hbm_to_smem %s1954_s0, 32, %s1530_s28, [#allocation3] }
   0xa   :  { %s1302_s10 = scalar_lea.vmem %s14_s9, 32  ;;  %p1307_p4 = scmp.lt.s32.totalorder %s14_s9, %s14_s9 }
   0xb   :  { %p1303_p3 = scmp.ne.s32.totalorder %s14_s9, %s1302_s10  ;;  %p1308_p5 = scmp.lt.s32.totalorder %s1302_s10, %s1302_s10 }
   0xd   :  { %p1309_p6 = por %p1308_p5, %p1307_p4 }
   0xf   :  { %p1310_p7 = pnand %p1309_p6, %p1303_p3 }
  0x11   :  { %1313 = shalt.err (!%p1310_p7)  }
  0x12   :  { %s1531_s11 = smov [#allocation5]  }
  0x13   :  { %16 = dma.vmem_to_smem %s14_s9, 32, %s1531_s11, [#allocation3] }
  0x14   :  { %1472 = dma.done.wait [#allocation3], 64 }
  0x15   :  { %1473 = vsyncadd [#allocation3], 4294967232 }
  0x16   :  { %18 = sfence }
  0x17   :  { %19 = vsyncpa [#allocation7], 0 }
  0x18   :  { %21 = vsyncpa [#allocation7 + $0x1], 0 }
  0x19   :  { %22 = vsyncpa [#allocation10], 0 }
  0x1a   :  { %23 = vsyncpa [#allocation8], 0 }
  0x1b   :  { %25 = vsyncpa [#allocation8 + $0x1], 0  ;;  %s1592_s0 = smov 0   ;;  %s1594_s1 = smov 0  }
  0x1c   :  { %s1596_s12 = smov 0   ;;  %s1598_s13 = smov 0  }
  0x1d   :  { %s1600_s14 = smov 0   ;;  %s1602_s15 = smov 0  }
  0x1e   :  { %s1604_s16 = smov 0   ;;  %s1606_s17 = smov 0  }
  0x1f   :  { %s1608_s18 = smov 0   ;;  %s1610_s19 = smov 0  }
  0x20   :  { %s1612_s20 = smov 0  }
  0x21 LB: > { %1985 = sst [smem:[#allocation19_spill]] %s1488_s0  ;;  %s949_s21 = sadd.s32 4294967295, %s1528_s20   ;;  %s1528_s20 = sphi %s1612_s20, %s31_s20   ;;  %s1524_s19 = sphi %s1610_s19, %s2034_s19   ;;  %s1520_s18 = sphi %s1608_s18, %s2026_s18   ;;  %s1516_s17 = sphi %s1606_s17, %s2033_s17   ;;  %s1512_s16 = sphi %s1604_s16, %s2025_s16   ;;  %s1508_s15 = sphi %s1602_s15, %s2032_s15   ;;  %s1504_s14 = sphi %s1600_s14, %s2031_s14   ;;  %s1500_s13 = sphi %s1598_s13, %s2030_s13   ;;  %s1496_s12 = sphi %s1596_s12, %s2024_s12   ;;  %s1492_s1 = sphi %s1594_s1, %s2029_s1   ;;  %s1488_s0 = sphi %s1592_s0, %s2028_s0  }
  0x22   : > { %1986 = sst [smem:[#allocation20_spill]] %s1496_s12  ;;  %p75_p8 = scmp.ne.s32.totalorder %s1508_s15, %s1504_s14 }
  0x23   : > { %1987 = sst [smem:[#allocation21_spill]] %s1516_s17  ;;  %p76_p9 = scmp.eq.s32.totalorder %s1528_s20, 0 }
  0x24   : > { %1988 = sst [smem:[#allocation22_spill]] %s1520_s18  ;;  %p81_p10 = scmp.ne.s32.totalorder %s1504_s14, %s1500_s13 }
  0x25   : > { %s950_s22 = sadd.s32 4294967294, %s1528_s20   ;;  %p1651_p11 = scmp.eq.s32.totalorder %s949_s21, 0 }
  0x26   : > { %p1655_p12 = por %p76_p9, %p75_p8  ;;  %p167_p13 = scmp.ne.s32.totalorder %s1496_s12, %s1492_s1 }
  0x27   : > { %s1989_s23 = scalar_select %p1651_p11, 1, 0 }
  0x28   : > { %s1990_s24 = scalar_select %p1655_p12, 1, 0 }
  0x29   : > { %p1663_p0 = por %p1651_p11, %p81_p10  ;;  %p168_p1 = scmp.eq.s32.totalorder %s949_s21, 3 }
  0x2a   : > { %p173_p2 = scmp.ne.s32.totalorder %s1492_s1, %s1488_s0  ;;  %p174_p3 = scmp.eq.s32.totalorder %s950_s22, 3 }
  0x2b   : > { %s1991_s25 = scalar_select %p1663_p0, 1, 0 }
  0x2c   : > { %p1669_p4 = por %p168_p1, %p167_p13  ;;  %p953_p5 = scmp.ge.s32.totalorder %s1528_s20, 1 }
  0x2d   : > { %p1674_p6 = por %p174_p3, %p173_p2  ;;  %p181_p7 = scmp.lt.s32.totalorder %s1528_s20, 5 }
  0x2e   : > { %s1992_s26 = scalar_select %p1669_p4, 1, 0 }
  0x2f   : > { %s1994_s27 = scalar_select %p1674_p6, 1, 0 }
  0x30   : > { %1993 = sst [smem:[#allocation23_spill]] %s1992_s26  ;;  %p1679_p8 = pnand %p953_p5, %p181_p7 }
  0x31   : > { %1995 = sst [smem:[#allocation24_spill]] %s1994_s27  ;;  %s1532_s29 = smov [#allocation9]  }
  0x32   : > { %s1996_s28 = scalar_select %p1679_p8, 1, 0 }
  0x33   : > { %s193_s30 = sshll.u32 %s1532_s29, 4  ;;  %p1147_p9 = pneg %p1679_p8  ;;  %s194_s30 = int_to_ptr.vmem [resolvable:$true] %s193_s30 }
  0x34   : > { %p1961_p10 = scmp.lt.s32.totalorder %s1528_s20, 4  ;;  %s1999_s3 = sld [smem:[#allocation28_spill]] }
  0x35   : > { %p1688_p13 = pnand %p1147_p9, %p1651_p11 }
  0x36   : > { %p1698_p1 = pnand %p1961_p10, %p1655_p12 }
  0x37   : > { %p1316_p3 = pneg %p1688_p13 }
  0x38   : > { %s1998_s9 = scalar_select %p1698_p1, 1, 0 }
  0x3a   : > { %s1314_s13 = scalar_lea.hbm %s1999_s3, 2048 }
  0x3b   : > { %p1315_p2 = scmp.ne.s32.totalorder %s1999_s3, %s1314_s13  ;;  %p1321_p9 = scmp.lt.u32.totalorder %s1314_s13, %s1999_s3 }
  0x3d   : > { %p1317_p5 = pnand %p1316_p3, %p1315_p2 }
  0x3f   : > { %p1318_p7 = pneg %p1317_p5 }
  0x41   : > { %p1323_p10 = pnand %p1321_p9, %p1318_p7 }
  0x43   : > { %1326 = shalt.err (!%p1323_p10)
}
  0x44   : > { %s1327_s27 = scalar_lea.vmem %s194_s30, 2048  ;;  %p1335_p0 = scmp.lt.s32.totalorder %s194_s30, %s194_s30 }
  0x45   : > { %p1328_p6 = scmp.ne.s32.totalorder %s194_s30, %s1327_s27  ;;  %p1336_p8 = scmp.lt.s32.totalorder %s1327_s27, %s1327_s27 }
  0x47   : > { %p1330_p4 = pnand %p1328_p6, %p1316_p3  ;;  %p1337_p1 = por %p1336_p8, %p1335_p0 }
  0x49   : > { %p1331_p11 = pneg %p1330_p4 }
  0x4b   : > { %p1338_p12 = pnand %p1337_p1, %p1331_p11 }
  0x4d   : > { %1341 = shalt.err (!%p1338_p12)
}
  0x4e   : > { %s1975_s10 = smov 64   ;;  %s1976_s11 = smov 4  }
  0x4f   : > { %1150 = dma.hbm_to_vmem [thread:$0]  (!%p1688_p13), %s1999_s3, 2048, %s194_s30, [#allocation10], %s1975_s10, %s1975_s10, %s1976_s11  }
  0x50   : > { %s1535_s21 = smov [#allocation11]   ;;  %s2000_s4 = sld [smem:[#allocation29_spill]] }
  0x51   : > { %s206_s22 = sshll.u32 %s1535_s21, 4  ;;  %s207_s22 = int_to_ptr.vmem [resolvable:$true] %s206_s22 }
  0x56   : > { %s1342_s0 = scalar_lea.hbm %s2000_s4, 1024 }
  0x57   : > { %p1343_p11 = scmp.ne.s32.totalorder %s2000_s4, %s1342_s0  ;;  %p1349_p4 = scmp.lt.u32.totalorder %s1342_s0, %s2000_s4 }
  0x59   : > { %p1345_p12 = pnand %p1343_p11, %p1316_p3 }
  0x5b   : > { %p1346_p0 = pneg %p1345_p12 }
  0x5d   : > { %p1351_p6 = pnand %p1349_p4, %p1346_p0 }
  0x5f   : > { %1354 = shalt.err (!%p1351_p6)
}
  0x60   : > { %s1355_s30 = scalar_lea.vmem %s207_s22, 1024  ;;  %p1363_p2 = scmp.lt.s32.totalorder %s207_s22, %s207_s22 }
  0x61   : > { %p1356_p8 = scmp.ne.s32.totalorder %s207_s22, %s1355_s30  ;;  %p1364_p5 = scmp.lt.s32.totalorder %s1355_s30, %s1355_s30 }
  0x63   : > { %p1358_p10 = pnand %p1356_p8, %p1316_p3  ;;  %p1365_p7 = por %p1364_p5, %p1363_p2 }
  0x65   : > { %p1359_p1 = pneg %p1358_p10 }
  0x67   : > { %p1366_p9 = pnand %p1365_p7, %p1359_p1 }
  0x69   : > { %1369 = shalt.err (!%p1366_p9)
}
  0x6a   : > { %1153 = dma.hbm_to_vmem [thread:$0]  (!%p1688_p13), %s2000_s4, 1024, %s207_s22, [#allocation10], %s1975_s10, %s1975_s10, %s1976_s11  }
  0x6b   : > { %s40_s0 = sadd.s32 1, %s1520_s18  ;;  %s43_s17 = sadd.s32 1, %s1524_s19 }
  0x6c   : > { %p41_p3 = scmp.ge.s32.totalorder %s40_s0, 2  ;;  %s47_s26 = sshra.s32 %s1520_s18, 7 }
  0x6d   : > { %s52_s7 = sand.u32 127, %s1520_s18  ;;  %s157_s8 = sadd.s32 1, %s1496_s12 }
  0x6e   : > { %s2036_s0 = smov (%p41_p3, %s40_s0), 0  ;;  %s2038_s17 = smov (!%p41_p3, %s43_s17), %s1524_s19 }
  0x6f   : > { %2001 = sst [smem:[#allocation25_spill]] %s2036_s0  ;;  %s49_s13 = sadd.s32 %s1524_s19, %s47_s26 }
  0x70   : > { %p45_p11 = scmp.ge.s32.totalorder %s2038_s17, 2  ;;  %s951_s21 = sshll.u32 %s49_s13, 7 }
  0x71   : > { %s53_s22 = sadd.s32 %s951_s21, %s52_s7  ;;  %s55_s29 = sshra.s32 %s2036_s0, 7 }
  0x72   : > { %s2040_s17 = smov (%p45_p11, %s2038_s17), 0  ;;  %s54_s27 = sld [smem:[#allocation5 + %s53_s22]] }
  0x73   : > { %2002 = sst [smem:[#allocation26_spill]] %s2040_s17  ;;  %s60_s30 = sand.u32 127, %s2036_s0 }
  0x74   : > { %s57_s5 = sadd.s32 %s55_s29, %s2040_s17  ;;  %s63_s6 = ssub.s32 %s1524_s19, %s2040_s17 }
  0x75   : > { %s952_s10 = sshll.u32 %s57_s5, 7  ;;  %p155_p13 = scmp.eq.s32.totalorder %s63_s6, 0 }
  0x76   : > { %s61_s26 = sadd.s32 %s952_s10, %s60_s30  ;;  %s223_s13 = sand.u32 1, %s1508_s15  }
  0x77   : > { %s62_s11 = sld [smem:[#allocation5 + %s61_s26]]  ;;  %s68_s21 = sadd.s32 1, %s1508_s15 }
  0x78   : > { %s1768_s7 = scalar_select %p155_p13, %s1496_s12, %s157_s8  }
  0x79   : > { %s957_s3 = sshll.u32 %s223_s13, 6  ;;  %p2004_p12 = scmp.ne.s32.totalorder %s1990_s24, 0 }
  0x7a   : > { %2003 = sst [smem:[#allocation27_spill]] %s1768_s7  ;;  %p2006_p0 = scmp.lt.s32.totalorder %s1528_s20, 4 }
  0x7b   : > { %s2042_s22 = smov (!%p2004_p12, %s53_s22), 0  ;;  %s1003_s30 = sshll.u32 %s1524_s19, 5 }
  0x7c   : > { %s2005_s4 = scalar_select %p2004_p12, [#allocation5], [#allocation13] }
  0x7d   : > { %p2007_p4 = pmov %p2006_p0  ;;  %s64_s29 = ssub.s32 %s54_s27, %s62_s11 }
  0x7e   : > { %s2044_s4 = smov (!%p2006_p0, %s2005_s4), [#allocation14]  ;;  %s65_s5 = sor.u32 %s64_s29, %s63_s6 }
  0x7f   : > { %s2046_s22 = smov (!%p2007_p4, %s2042_s22), 0  ;;  %p66_p6 = scmp.eq.s32.totalorder %s65_s5, 0 }
  0x80   : > { %s235_s10 = sld [smem:[%s2044_s4 + %s2046_s22]]  ;;  %s227_s26 = scalar_lea.vmem [#allocation6], %s957_s3 }
  0x81   : > { %s244_s8 = sshll.u32 %s227_s26, 4  ;;  %s1791_s4 = scalar_lea.sflag [#allocation7], %s223_s13  ;;  %s1784_s8 = int_to_ptr.vmem [resolvable:$true] %s244_s8 }
  0x82   : > { %s1782_s17 = scalar_select %p66_p6, %s1508_s15, %s68_s21  }
  0x83   : > { %p2008_p10 = scmp.ne.s32.totalorder %s1998_s9, 0  ;;  %s1375_s18 = scalar_lea.hbm %s1955_s2, 4096 }
  0x85   : > { %p1372_p1 = pneg %p2008_p10 }
  0x86   : > { %s241_s0 = sadd.s32 %s1003_s30, %s235_s10 }
  0x87   : > { %s961_s24 = sshll.u32 %s241_s0, 6 }
  0x88   : > { %s1789_s12 = scalar_lea.hbm %s1955_s2, %s961_s24 }
  0x89   : > { %s1370_s11 = scalar_lea.hbm %s1789_s12, 1024  ;;  %p1376_p7 = scmp.lt.u32.totalorder %s1789_s12, %s1955_s2 }
  0x8a   : > { %p1371_p8 = scmp.ne.s32.totalorder %s1789_s12, %s1370_s11  ;;  %p1377_p9 = scmp.lt.u32.totalorder %s1375_s18, %s1370_s11 }
  0x8b   : > { %p1379_p11 = scmp.lt.u32.totalorder %s1370_s11, %s1789_s12 }
  0x8c   : > { %p1373_p2 = pnand %p1372_p1, %p1371_p8  ;;  %p1378_p3 = por %p1377_p9, %p1376_p7 }
  0x8e   : > { %p1374_p5 = pneg %p1373_p2  ;;  %p1380_p13 = por %p1379_p11, %p1378_p3 }
  0x90   : > { %p1381_p12 = pnand %p1380_p13, %p1374_p5 }
  0x92   : > { %1384 = shalt.err (!%p1381_p12)
}
  0x93   : > { %s1385_s6 = scalar_lea.vmem %s1784_s8, 1024  ;;  %s1536_s13 = smov [#allocation6]  }
  0x94   : > { %p1386_p0 = scmp.ne.s32.totalorder %s1784_s8, %s1385_s6  ;;  %s1390_s7 = sshll.u32 %s1536_s13, 4  ;;  %s1391_s7 = int_to_ptr.vmem [resolvable:$false] %s1390_s7 }
  0x95   : > { %s1392_s21 = scalar_lea.vmem %s1391_s7, 2048  ;;  %p1393_p8 = scmp.lt.s32.totalorder %s1784_s8, %s1391_s7 }
  0x96   : > { %p1388_p4 = pnand %p1386_p0, %p1372_p1  ;;  %p1394_p2 = scmp.lt.s32.totalorder %s1392_s21, %s1385_s6 }
  0x98   : > { %p1389_p6 = pneg %p1388_p4  ;;  %p1395_p7 = por %p1394_p2, %p1393_p8 }
  0x9a   : > { %p1396_p9 = pnand %p1395_p7, %p1389_p6 }
  0x9c   : > { %1399 = shalt.err (!%p1396_p9)
}
  0x9d   : > { %s1537_s29 = smov 128   ;;  %s2009_s5 = smov 4  }
  0x9e   : > { %s2010_s10 = smov 64   ;;  %p2011_p1 = scmp.ne.s32.totalorder %s1996_s28, 0 }
  0x9f   : > { %1159 = dma.hbm_to_vmem [thread:$0]  (!%p2008_p10), %s1789_s12, 1024, %s1784_s8, %s1791_s4, %s1537_s29, %s2010_s10, %s2009_s5  }
  0xa0   : > { %256 = sbr.rel (%p2011_p1) target bundleno = 748 (0x2ec), region = 36  ;;  %s258_s30 = sand.u32 (!%p2011_p1), 1, %s1504_s14  }
  0xa1   : > { %s963_s26 = sshll.u32 (!%p2011_p1), %s258_s30, 6  ;;  %s259_s24 = scalar_lea.sflag (!%p2011_p1), [#allocation7], %s258_s30 }
  0xa2   : > { %s1824_s11 = scalar_lea.vmem (!%p2011_p1), [#allocation6], %s963_s26  ;;  %p2012_p5 = scmp.ne.s32.totalorder (!%p2011_p1), %s1991_s25, 0 }
  0xa7   : > { %1475 = dma.done.wait (%p2012_p5), %s259_s24, 1024  }
  0xa8   : > { %1477 = vsyncadd (%p2012_p5), %s259_s24, 4294966272  ;;  %p2013_p3 = scmp.ne.s32.totalorder %s1989_s23, 0 }
  0xaa   : > { %1479 = dma.done.wait (%p2013_p3), [#allocation10], 3072  }
  0xab   : > { %1481 = vsyncadd (%p2013_p3), [#allocation10], 4294964224  ;;  %s292_s12 = sand.u32 1, %s1492_s1   ;;  %p967_p10 = scmp.ne.s32.totalorder %s1512_s16, 0 }
  0xac   : > { %s966_s28 = sshll.u32 %s292_s12, 7  ;;  %v1538_v0 = vmov (!%p967_p10), 0.0  }
  0xad   : > { %s1837_s9 = scalar_lea.vmem [#allocation12], %s966_s28  ;;  %309 = sbr.rel (%p967_p10) target bundleno = 181 (0xb5), region = 52  ;;  %310 = vst [vmem:[#allocation2] sm:$0xff] (!%p967_p10), %v1538_v0  ;;  %311 = vst [vmem:[#allocation2 + $0x8] sm:$0xff] (!%p967_p10), %v1538_v0 }
  0xae   : > { %312 = vst [vmem:[#allocation2 + $0x10] sm:$0xff] (!%p967_p10), %v1538_v0  ;;  %313 = vst [vmem:[#allocation2 + $0x18] sm:$0xff] (!%p967_p10), %v1538_v0 }
  0xaf   : > { %314 = vst [vmem:[#allocation2 + $0x20] sm:$0xff] (!%p967_p10), %v1538_v0  ;;  %315 = vst [vmem:[#allocation2 + $0x28] sm:$0xff] (!%p967_p10), %v1538_v0 }
  0xb0   : > { %316 = vst [vmem:[#allocation2 + $0x30] sm:$0xff] (!%p967_p10), %v1538_v0  ;;  %317 = vst [vmem:[#allocation2 + $0x38] sm:$0xff] (!%p967_p10), %v1538_v0 }
  0xb1   : > { %318 = vst [vmem:[#allocation2 + $0x40] sm:$0xff] (!%p967_p10), %v1538_v0  ;;  %319 = vst [vmem:[#allocation2 + $0x48] sm:$0xff] (!%p967_p10), %v1538_v0 }
  0xb2   : > { %320 = vst [vmem:[#allocation2 + $0x50] sm:$0xff] (!%p967_p10), %v1538_v0  ;;  %321 = vst [vmem:[#allocation2 + $0x58] sm:$0xff] (!%p967_p10), %v1538_v0 }
  0xb3   : > { %322 = vst [vmem:[#allocation2 + $0x60] sm:$0xff] (!%p967_p10), %v1538_v0  ;;  %323 = vst [vmem:[#allocation2 + $0x68] sm:$0xff] (!%p967_p10), %v1538_v0 }
  0xb4   : > { %324 = vst [vmem:[#allocation2 + $0x70] sm:$0xff] %v1538_v0  ;;  %325 = vst [vmem:[#allocation2 + $0x78] sm:$0xff] %v1538_v0 }
  0xb5 PF: > { %s2014_s23 = sld [smem:[#allocation21_spill]]  ;;  %s326_s25 = sshra.s32 %s1512_s16, 7 }
  0xb6   : > { %s331_s8 = sand.u32 127, %s1512_s16 }
  0xbb   : > { %s328_s4 = sadd.s32 %s2014_s23, %s326_s25 }
  0xbc   : > { %s968_s3 = sshll.u32 %s328_s4, 7 }
  0xbd   : > { %s332_s0 = sadd.s32 %s968_s3, %s331_s8 }
  0xbe   : > { %s333_s18 = sld [smem:[#allocation4 + %s332_s0]] }
  0xc4   : > { %p969_p11 = scmp.eq.s32.totalorder %s333_s18, 0 }
  0xc5   : > { %s970_s22 = sshll.u32 (!%p969_p11), %s1512_s16, 7  ;;  %v1276_v1 = vld [vmem:[%s1824_s11] sm:$0xff] (!%p969_p11)   ;;  %v1278_v11 = vld [vmem:[%s1824_s11 + $0x8] sm:$0xff] (!%p969_p11)   ;;  %v1280_v13 = vld [vmem:[%s1824_s11 + $0x10] sm:$0xff] (!%p969_p11)  }
  0xc6   : > { %337 = sbr.rel (%p969_p11) target bundleno = 460 (0x1cc), region = 56  ;;  %s339_s27 = sshra.s32 (!%p969_p11), %s970_s22, 3  ;;  %v1277_v2 = vld [vmem:[%s1824_s11 + $0x20] sm:$0xff] (!%p969_p11)   ;;  %1053 = vmatprep.mubr.bf16.mxu0 (!%p969_p11), %v1276_v1  ;;  %v1279_v12 = vld [vmem:[%s1824_s11 + $0x28] sm:$0xff] (!%p969_p11)   ;;  %v1281_v14 = vld [vmem:[%s1824_s11 + $0x30] sm:$0xff] (!%p969_p11)  }
  0xc7   : > { %s971_s6 = sshll.u32 (!%p969_p11), %s339_s27, 2  ;;  %1061 = vmatprep.mubr.bf16.mxu1 (!%p969_p11), %v1277_v2  ;;  %v1282_v15 = vld [vmem:[%s1824_s11 + $0x18] sm:$0xff] (!%p969_p11)   ;;  %v361_v17 = vld [vmem:[#allocation2 + $0x10] sm:$0xff] (!%p969_p11)  ;;  %v359_v19 = vld [vmem:[#allocation2] sm:$0xff] (!%p969_p11) }
  0xc8   : > { %s1846_s13 = scalar_lea.vmem (!%p969_p11), [#allocation9], %s971_s6  ;;  %v1283_v16 = vld [vmem:[%s1824_s11 + $0x38] sm:$0xff] (!%p969_p11)   ;;  %v369_v18 = vld [vmem:[#allocation2 + $0x50] sm:$0xff] (!%p969_p11)  ;;  %v367_v20 = vld [vmem:[#allocation2 + $0x40] sm:$0xff] (!%p969_p11) }
  0xc9   : > { %v1268_v3 = vld [vmem:[%s1846_s13] sm:$0xff] (!%p969_p11)   ;;  %v1269_v4 = vld [vmem:[%s1846_s13 + $0x8] sm:$0xff] (!%p969_p11)   ;;  %v1270_v5 = vld [vmem:[%s1846_s13 + $0x10] sm:$0xff] (!%p969_p11)  }
  0xca   : > { %1037 = vmatprep.subr.bf16.mxu0 (!%p969_p11), %v1268_v3  ;;  %1101 = vmatprep.subr.bf16.mxu1 (!%p969_p11), %v1268_v3  ;;  %v1271_v6 = vld [vmem:[%s1846_s13 + $0x18] sm:$0xff] (!%p969_p11)   ;;  %v1272_v7 = vld [vmem:[%s1846_s13 + $0x20] sm:$0xff] (!%p969_p11)   ;;  %v1273_v8 = vld [vmem:[%s1846_s13 + $0x28] sm:$0xff] (!%p969_p11)  }
  0xcb   : > { %1038 = vmatpush3.bf16.msra.mxu0 (!%p969_p11), %v1268_v3  ;;  %1109 = vmatpush3.bf16.msra.mxu1 (!%p969_p11), %v1268_v3  ;;  %v1274_v9 = vld [vmem:[%s1846_s13 + $0x30] sm:$0xff] (!%p969_p11)   ;;  %v1275_v10 = vld [vmem:[%s1846_s13 + $0x38] sm:$0xff] (!%p969_p11)   ;;  %v360_v29 = vld [vmem:[#allocation2 + $0x8] sm:$0xff] (!%p969_p11) }
  0xcc   : > { %1039 = vmatprep.subr.bf16.mxu0 (!%p969_p11), %v1269_v4  ;;  %1102 = vmatprep.subr.bf16.mxu1 (!%p969_p11), %v1269_v4  ;;  %v362_v23 = vld [vmem:[#allocation2 + $0x18] sm:$0xff] (!%p969_p11)  ;;  %v368_v30 = vld [vmem:[#allocation2 + $0x48] sm:$0xff] (!%p969_p11)  ;;  %v365_v41 = vld [vmem:[#allocation2 + $0x30] sm:$0xff] (!%p969_p11) }
  0xcd   : > { %v370_v24 = vld [vmem:[#allocation2 + $0x58] sm:$0xff]  ;;  %v373_v42 = vld [vmem:[#allocation2 + $0x70] sm:$0xff]  ;;  %v363_v43 = vld [vmem:[#allocation2 + $0x20] sm:$0xff] }
  0xce   : > { %v371_v44 = vld [vmem:[#allocation2 + $0x60] sm:$0xff]  ;;  %v366_v47 = vld [vmem:[#allocation2 + $0x38] sm:$0xff]  ;;  %v364_v53 = vld [vmem:[#allocation2 + $0x28] sm:$0xff] }
  0xcf   : > { %1040 = vmatpush3.bf16.msra.mxu0 %v1269_v4  ;;  %1110 = vmatpush3.bf16.msra.mxu1 %v1269_v4  ;;  %v374_v48 = vld [vmem:[#allocation2 + $0x78] sm:$0xff]  ;;  %v372_v54 = vld [vmem:[#allocation2 + $0x68] sm:$0xff] }
  0xd0   : > { %1041 = vmatprep.subr.bf16.mxu0 %v1270_v5  ;;  %1103 = vmatprep.subr.bf16.mxu1 %v1270_v5 }
  0xd3   : > { %1042 = vmatpush3.bf16.msra.mxu0 %v1270_v5  ;;  %1111 = vmatpush3.bf16.msra.mxu1 %v1270_v5 }
  0xd4   : > { %1043 = vmatprep.subr.bf16.mxu0 %v1271_v6  ;;  %1104 = vmatprep.subr.bf16.mxu1 %v1271_v6 }
  0xd7   : > { %1044 = vmatpush3.bf16.msra.mxu0 %v1271_v6  ;;  %1112 = vmatpush3.bf16.msra.mxu1 %v1271_v6 }
  0xd8   : > { %1045 = vmatprep.subr.bf16.mxu0 %v1272_v7  ;;  %1105 = vmatprep.subr.bf16.mxu1 %v1272_v7 }
  0xdb   : > { %1046 = vmatpush3.bf16.msra.mxu0 %v1272_v7  ;;  %1113 = vmatpush3.bf16.msra.mxu1 %v1272_v7 }
  0xdc   : > { %1047 = vmatprep.subr.bf16.mxu0 %v1273_v8  ;;  %1106 = vmatprep.subr.bf16.mxu1 %v1273_v8 }
  0xdf   : > { %1048 = vmatpush3.bf16.msra.mxu0 %v1273_v8  ;;  %1114 = vmatpush3.bf16.msra.mxu1 %v1273_v8 }
  0xe0   : > { %1049 = vmatprep.subr.bf16.mxu0 %v1274_v9  ;;  %1107 = vmatprep.subr.bf16.mxu1 %v1274_v9 }
  0xe3   : > { %1050 = vmatpush3.bf16.msra.mxu0 %v1274_v9  ;;  %1115 = vmatpush3.bf16.msra.mxu1 %v1274_v9 }
  0xe4   : > { %1051 = vmatprep.subr.bf16.mxu0 %v1275_v10  ;;  %1108 = vmatprep.subr.bf16.mxu1 %v1275_v10 }
  0xe7   : > { %1052 = vmatpush3.bf16.msra.mxu0 %v1275_v10  ;;  %1116 = vmatpush3.bf16.msra.mxu1 %v1275_v10 }
  0xea   : > { %1054 = vmatmul.mubr.bf16.vlgmr.msra.gmra.mrb[0].mxu0 %v1278_v11  ;;  %1062 = vmatmul.mubr.bf16.vlgmr.msra.gmra.mrb[0].mxu1 %v1279_v12 }
  0xeb   : > { %1057 = vmatprep.mubr.bf16.mxu0 %v1280_v13  ;;  %1065 = vmatprep.mubr.bf16.mxu1 %v1281_v14 }
  0xf2   : > { %1058 = vmatmul.mubr.bf16.gmra.mrb[4].mxu0 %v1282_v15  ;;  %1066 = vmatmul.mubr.bf16.gmra.mrb[4].mxu1 %v1283_v16 }
 0x1bd   : > { %v1055_v21 = vpop.f32.mrb[0].mxu0  ;;  %v1063_v22 = vpop.f32.mrb[0].mxu1 }
 0x1be   : > { %v586_v25 = vadd.f32 %v1055_v21, %v361_v17  ;;  %v594_v26 = vadd.f32 %v1063_v22, %v369_v18  ;;  %v521_v27 = vpop.f32.mrb[1].mxu0  ;;  %v553_v28 = vpop.f32.mrb[1].mxu1 }
 0x1bf   : > { %v584_v31 = vadd.f32 %v521_v27, %v359_v19  ;;  %v592_v32 = vadd.f32 %v553_v28, %v367_v20  ;;  %v1056_v33 = vpop.f32.mrb[2].mxu0  ;;  %v1064_v34 = vpop.f32.mrb[2].mxu1 }
 0x1c0   : > { %602 = vst [vmem:[#allocation2 + $0x10] sm:$0xff] %v586_v25  ;;  %610 = vst [vmem:[#allocation2 + $0x50] sm:$0xff] %v594_v26  ;;  %v587_v35 = vadd.f32 %v1056_v33, %v362_v23  ;;  %v595_v36 = vadd.f32 %v1064_v34, %v370_v24  ;;  %v524_v37 = vpop.f32.mrb[3].mxu0  ;;  %v556_v38 = vpop.f32.mrb[3].mxu1 }
 0x1c1   : > { %600 = vst [vmem:[#allocation2] sm:$0xff] %v584_v31  ;;  %608 = vst [vmem:[#allocation2 + $0x40] sm:$0xff] %v592_v32  ;;  %v585_v39 = vadd.f32 %v524_v37, %v360_v29  ;;  %v593_v40 = vadd.f32 %v556_v38, %v368_v30 }
 0x1c2   : > { %603 = vst [vmem:[#allocation2 + $0x18] sm:$0xff] %v587_v35  ;;  %611 = vst [vmem:[#allocation2 + $0x58] sm:$0xff] %v595_v36 }
 0x1c3   : > { %601 = vst [vmem:[#allocation2 + $0x8] sm:$0xff] %v585_v39  ;;  %609 = vst [vmem:[#allocation2 + $0x48] sm:$0xff] %v593_v40 }
 0x1c5   : > { %v1059_v45 = vpop.f32.mrb[4].mxu0  ;;  %v1067_v46 = vpop.f32.mrb[4].mxu1 }
 0x1c6   : > { %v590_v49 = vadd.f32 %v1059_v45, %v365_v41  ;;  %v598_v50 = vadd.f32 %v1067_v46, %v373_v42  ;;  %v537_v51 = vpop.f32.mrb[5].mxu0  ;;  %v569_v52 = vpop.f32.mrb[5].mxu1 }
 0x1c7   : > { %v588_v55 = vadd.f32 %v537_v51, %v363_v43  ;;  %v596_v56 = vadd.f32 %v569_v52, %v371_v44  ;;  %v1060_v57 = vpop.f32.mrb[6].mxu0  ;;  %v1068_v58 = vpop.f32.mrb[6].mxu1 }
 0x1c8   : > { %606 = vst [vmem:[#allocation2 + $0x30] sm:$0xff] %v590_v49  ;;  %614 = vst [vmem:[#allocation2 + $0x70] sm:$0xff] %v598_v50  ;;  %v591_v59 = vadd.f32 %v1060_v57, %v366_v47  ;;  %v599_v60 = vadd.f32 %v1068_v58, %v374_v48  ;;  %v540_v61 = vpop.f32.mrb[7].mxu0  ;;  %v572_v62 = vpop.f32.mrb[7].mxu1 }
 0x1c9   : > { %604 = vst [vmem:[#allocation2 + $0x20] sm:$0xff] %v588_v55  ;;  %612 = vst [vmem:[#allocation2 + $0x60] sm:$0xff] %v596_v56  ;;  %v589_v63 = vadd.f32 %v540_v61, %v364_v53  ;;  %v597_v0 = vadd.f32 %v572_v62, %v372_v54 }
 0x1ca   : > { %607 = vst [vmem:[#allocation2 + $0x38] sm:$0xff] %v591_v59  ;;  %615 = vst [vmem:[#allocation2 + $0x78] sm:$0xff] %v599_v60 }
 0x1cb   : > { %605 = vst [vmem:[#allocation2 + $0x28] sm:$0xff] %v589_v63  ;;  %613 = vst [vmem:[#allocation2 + $0x68] sm:$0xff] %v597_v0 }
 0x1cc PF: > { %p988_p13 = scmp.ne.s32.totalorder %s1512_s16, 1 }
 0x1cd   : > { %v1284_v1 = vld [vmem:[#allocation11] sm:$0xff] (!%p988_p13)   ;;  %v1285_v2 = vld [vmem:[#allocation11 + $0x8] sm:$0xff] (!%p988_p13)   ;;  %v1286_v3 = vld [vmem:[#allocation11 + $0x10] sm:$0xff] (!%p988_p13)   ;;  %s2015_s21 = sld [smem:[#allocation30_spill]] (!%p988_p13) }
 0x1ce   : > { %619 = sbr.rel (%p988_p13) target bundleno = 720 (0x2d0), region = 60  ;;  %1069 = vmatprep.subr.bf16.mxu0 (!%p988_p13), %v1284_v1  ;;  %1117 = vmatprep.subr.bf16.mxu1 (!%p988_p13), %v1284_v1  ;;  %v1287_v4 = vld [vmem:[#allocation11 + $0x18] sm:$0xff] (!%p988_p13)   ;;  %v620_v5 = vld [vmem:[#allocation2] sm:$0xff] (!%p988_p13)  ;;  %v621_v6 = vld [vmem:[#allocation2 + $0x8] sm:$0xff] (!%p988_p13) }
 0x1cf   : > { %1070 = vmatpush3.bf16.msra.mxu0 (!%p988_p13), %v1284_v1  ;;  %1125 = vmatpush3.bf16.msra.mxu1 (!%p988_p13), %v1284_v1  ;;  %v628_v7 = vld [vmem:[#allocation2 + $0x40] sm:$0xff] (!%p988_p13)  ;;  %v636_v8 = vpack.c.bf16 (!%p988_p13), %v621_v6, %v620_v5  ;;  %v629_v9 = vld [vmem:[#allocation2 + $0x48] sm:$0xff] (!%p988_p13)  ;;  %v1290_v13 = vld [vmem:[#allocation11 + $0x30] sm:$0xff] (!%p988_p13)  }
 0x1d0   : > { %1071 = vmatprep.subr.bf16.mxu0 (!%p988_p13), %v1285_v2  ;;  %1118 = vmatprep.subr.bf16.mxu1 (!%p988_p13), %v1285_v2  ;;  %v640_v10 = vpack.c.bf16 (!%p988_p13), %v629_v9, %v628_v7  ;;  %v1288_v11 = vld [vmem:[#allocation11 + $0x20] sm:$0xff] (!%p988_p13)   ;;  %v1289_v12 = vld [vmem:[#allocation11 + $0x28] sm:$0xff] (!%p988_p13)   ;;  %v1291_v14 = vld [vmem:[#allocation11 + $0x38] sm:$0xff] (!%p988_p13)  }
 0x1d1   : > { %1085 = vmatprep.mubr.bf16.mxu0 (!%p988_p13), %v636_v8  ;;  %v622_v15 = vld [vmem:[#allocation2 + $0x10] sm:$0xff] (!%p988_p13)  ;;  %v623_v16 = vld [vmem:[#allocation2 + $0x18] sm:$0xff] (!%p988_p13)  ;;  %v624_v19 = vld [vmem:[#allocation2 + $0x20] sm:$0xff] (!%p988_p13) }
 0x1d2   : > { %1093 = vmatprep.mubr.bf16.mxu1 (!%p988_p13), %v640_v10  ;;  %v630_v17 = vld [vmem:[#allocation2 + $0x50] sm:$0xff] (!%p988_p13)  ;;  %v631_v18 = vld [vmem:[#allocation2 + $0x58] sm:$0xff] (!%p988_p13)  ;;  %v625_v20 = vld [vmem:[#allocation2 + $0x28] sm:$0xff] (!%p988_p13)  ;;  %v637_v23 = vpack.c.bf16 (!%p988_p13), %v623_v16, %v622_v15 }
 0x1d3   : > { %1072 = vmatpush3.bf16.msra.mxu0 (!%p988_p13), %v1285_v2  ;;  %1126 = vmatpush3.bf16.msra.mxu1 (!%p988_p13), %v1285_v2  ;;  %v632_v21 = vld [vmem:[#allocation2 + $0x60] sm:$0xff] (!%p988_p13)  ;;  %v633_v22 = vld [vmem:[#allocation2 + $0x68] sm:$0xff] (!%p988_p13)  ;;  %v641_v24 = vpack.c.bf16 (!%p988_p13), %v631_v18, %v630_v17  ;;  %v638_v25 = vpack.c.bf16 (!%p988_p13), %v625_v20, %v624_v19  ;;  %v626_v27 = vld [vmem:[#allocation2 + $0x30] sm:$0xff] (!%p988_p13) }
 0x1d4   : > { %1073 = vmatprep.subr.bf16.mxu0 (!%p988_p13), %v1286_v3  ;;  %1119 = vmatprep.subr.bf16.mxu1 (!%p988_p13), %v1286_v3  ;;  %v642_v26 = vpack.c.bf16 (!%p988_p13), %v633_v22, %v632_v21  ;;  %v627_v28 = vld [vmem:[#allocation2 + $0x38] sm:$0xff] (!%p988_p13)  ;;  %v634_v29 = vld [vmem:[#allocation2 + $0x70] sm:$0xff] (!%p988_p13)  ;;  %v989_v33 = vld [vmem:[%s2015_s21] ss:$0 sm:$0xff] (!%p988_p13) }
 0x1d5   : > { %v635_v30 = vld [vmem:[#allocation2 + $0x78] sm:$0xff]  ;;  %v639_v31 = vpack.c.bf16 %v627_v28, %v626_v27 }
 0x1d6   : > { %v643_v32 = vpack.c.bf16 %v635_v30, %v634_v29 }
 0x1d7   : > { %1074 = vmatpush3.bf16.msra.mxu0 %v1286_v3  ;;  %1127 = vmatpush3.bf16.msra.mxu1 %v1286_v3 }
 0x1d8   : > { %1075 = vmatprep.subr.bf16.mxu0 %v1287_v4  ;;  %1120 = vmatprep.subr.bf16.mxu1 %v1287_v4 }
 0x1db   : > { %1076 = vmatpush3.bf16.msra.mxu0 %v1287_v4  ;;  %1128 = vmatpush3.bf16.msra.mxu1 %v1287_v4 }
 0x1dc   : > { %1077 = vmatprep.subr.bf16.mxu0 %v1288_v11  ;;  %1121 = vmatprep.subr.bf16.mxu1 %v1288_v11 }
 0x1df   : > { %1078 = vmatpush3.bf16.msra.mxu0 %v1288_v11  ;;  %1129 = vmatpush3.bf16.msra.mxu1 %v1288_v11 }
 0x1e0   : > { %1079 = vmatprep.subr.bf16.mxu0 %v1289_v12  ;;  %1122 = vmatprep.subr.bf16.mxu1 %v1289_v12 }
 0x1e3   : > { %1080 = vmatpush3.bf16.msra.mxu0 %v1289_v12  ;;  %1130 = vmatpush3.bf16.msra.mxu1 %v1289_v12 }
 0x1e4   : > { %1081 = vmatprep.subr.bf16.mxu0 %v1290_v13  ;;  %1123 = vmatprep.subr.bf16.mxu1 %v1290_v13 }
 0x1e7   : > { %1082 = vmatpush3.bf16.msra.mxu0 %v1290_v13  ;;  %1131 = vmatpush3.bf16.msra.mxu1 %v1290_v13 }
 0x1e8   : > { %1083 = vmatprep.subr.bf16.mxu0 %v1291_v14  ;;  %1124 = vmatprep.subr.bf16.mxu1 %v1291_v14 }
 0x1eb   : > { %1084 = vmatpush3.bf16.msra.mxu0 %v1291_v14  ;;  %1132 = vmatpush3.bf16.msra.mxu1 %v1291_v14 }
 0x1ee   : > { %1086 = vmatmul.mubr.bf16.vlgmr.msra.gmra.mrb[0].mxu0 %v637_v23  ;;  %1094 = vmatmul.mubr.bf16.vlgmr.msra.gmra.mrb[0].mxu1 %v641_v24 }
 0x1ef   : > { %1089 = vmatprep.mubr.bf16.mxu0 %v638_v25  ;;  %1097 = vmatprep.mubr.bf16.mxu1 %v642_v26 }
 0x1f6   : > { %1090 = vmatmul.mubr.bf16.gmra.mrb[4].mxu0 %v639_v31  ;;  %1098 = vmatmul.mubr.bf16.gmra.mrb[4].mxu1 %v643_v32 }
 0x2c1   : > { %v1087_v34 = vpop.f32.mrb[0].mxu0  ;;  %v1095_v35 = vpop.f32.mrb[0].mxu1 }
 0x2c2   : > { %v758_v36 = vadd.f32 %v1087_v34, %v989_v33  ;;  %v790_v37 = vadd.f32 %v1095_v35, %v989_v33  ;;  %v749_v38 = vpop.f32.mrb[1].mxu0  ;;  %v781_v39 = vpop.f32.mrb[1].mxu1 }
 0x2c3   : > { %v750_v40 = vadd.f32 %v989_v33, %v749_v38  ;;  %v782_v41 = vadd.f32 %v989_v33, %v781_v39  ;;  %v1088_v42 = vpop.f32.mrb[2].mxu0  ;;  %v1096_v43 = vpop.f32.mrb[2].mxu1 }
 0x2c4   : > { %814 = vst [vmem:[%s1837_s9 + $0x10] sm:$0xff] %v758_v36  ;;  %822 = vst [vmem:[%s1837_s9 + $0x50] sm:$0xff] %v790_v37  ;;  %v761_v44 = vadd.f32 %v1088_v42, %v989_v33  ;;  %v793_v45 = vadd.f32 %v1096_v43, %v989_v33  ;;  %v752_v46 = vpop.f32.mrb[3].mxu0  ;;  %v784_v47 = vpop.f32.mrb[3].mxu1 }
 0x2c5   : > { %812 = vst [vmem:[%s1837_s9] sm:$0xff] %v750_v40  ;;  %820 = vst [vmem:[%s1837_s9 + $0x40] sm:$0xff] %v782_v41  ;;  %v753_v48 = vadd.f32 %v989_v33, %v752_v46  ;;  %v785_v49 = vadd.f32 %v989_v33, %v784_v47 }
 0x2c6   : > { %815 = vst [vmem:[%s1837_s9 + $0x18] sm:$0xff] %v761_v44  ;;  %823 = vst [vmem:[%s1837_s9 + $0x58] sm:$0xff] %v793_v45 }
 0x2c7   : > { %813 = vst [vmem:[%s1837_s9 + $0x8] sm:$0xff] %v753_v48  ;;  %821 = vst [vmem:[%s1837_s9 + $0x48] sm:$0xff] %v785_v49 }
 0x2c9   : > { %v1091_v50 = vpop.f32.mrb[4].mxu0  ;;  %v1099_v51 = vpop.f32.mrb[4].mxu1 }
 0x2ca   : > { %v774_v52 = vadd.f32 %v1091_v50, %v989_v33  ;;  %v806_v53 = vadd.f32 %v1099_v51, %v989_v33  ;;  %v765_v54 = vpop.f32.mrb[5].mxu0  ;;  %v797_v55 = vpop.f32.mrb[5].mxu1 }
 0x2cb   : > { %v766_v56 = vadd.f32 %v989_v33, %v765_v54  ;;  %v798_v57 = vadd.f32 %v989_v33, %v797_v55  ;;  %v1092_v58 = vpop.f32.mrb[6].mxu0  ;;  %v1100_v59 = vpop.f32.mrb[6].mxu1 }
 0x2cc   : > { %818 = vst [vmem:[%s1837_s9 + $0x30] sm:$0xff] %v774_v52  ;;  %826 = vst [vmem:[%s1837_s9 + $0x70] sm:$0xff] %v806_v53  ;;  %v777_v60 = vadd.f32 %v1092_v58, %v989_v33  ;;  %v809_v61 = vadd.f32 %v1100_v59, %v989_v33  ;;  %v768_v62 = vpop.f32.mrb[7].mxu0  ;;  %v800_v63 = vpop.f32.mrb[7].mxu1 }
 0x2cd   : > { %816 = vst [vmem:[%s1837_s9 + $0x20] sm:$0xff] %v766_v56  ;;  %824 = vst [vmem:[%s1837_s9 + $0x60] sm:$0xff] %v798_v57  ;;  %v769_v0 = vadd.f32 %v989_v33, %v768_v62  ;;  %v801_v1 = vadd.f32 %v989_v33, %v800_v63 }
 0x2ce   : > { %819 = vst [vmem:[%s1837_s9 + $0x38] sm:$0xff] %v777_v60  ;;  %827 = vst [vmem:[%s1837_s9 + $0x78] sm:$0xff] %v809_v61 }
 0x2cf   : > { %817 = vst [vmem:[%s1837_s9 + $0x28] sm:$0xff] %v769_v0  ;;  %825 = vst [vmem:[%s1837_s9 + $0x68] sm:$0xff] %v801_v1 }
 0x2d0 PF: > { %s2016_s29 = sld [smem:[#allocation21_spill]]  ;;  %s2017_s5 = sld [smem:[#allocation23_spill]] }
 0x2d1   : > { %s2018_s24 = sld [smem:[#allocation31_spill]]  ;;  %s842_s28 = sshll.u32 %s1837_s9, 4  ;;  %s1889_s28 = int_to_ptr.vmem [resolvable:$true] %s842_s28 }
 0x2d2   : > { %s1893_s23 = scalar_lea.sflag [#allocation8], %s292_s12  ;;  %s1400_s25 = scalar_lea.vmem %s1889_s28, 2048 }
 0x2d3   : > { %p1401_p12 = scmp.ne.s32.totalorder %s1889_s28, %s1400_s25  ;;  %s1539_s8 = smov [#allocation12]  }
 0x2d4   : > { %s1404_s4 = sshll.u32 %s1539_s8, 4  ;;  %s1405_s4 = int_to_ptr.vmem [resolvable:$false] %s1404_s4 }
 0x2d5   : > { %s1406_s3 = scalar_lea.vmem %s1405_s4, 4096  ;;  %p1407_p8 = scmp.lt.s32.totalorder %s1889_s28, %s1405_s4 }
 0x2d6   : > { %s1004_s10 = sshll.u32 %s2016_s29, 11  ;;  %p2019_p0 = scmp.ne.s32.totalorder %s2017_s5, 0 }
 0x2d7   : > { %s1886_s11 = scalar_lea.hbm %s2018_s24, %s1004_s10  ;;  %p1408_p2 = scmp.lt.s32.totalorder %s1406_s3, %s1400_s25 }
 0x2d8   : > { %p1402_p4 = pnand %p1401_p12, %p2019_p0 }
 0x2d9   : > { %p1409_p7 = por %p1408_p2, %p1407_p8 }
 0x2da   : > { %p1403_p6 = pneg %p1402_p4 }
 0x2dc   : > { %p1410_p9 = pnand %p1409_p7, %p1403_p6 }
 0x2de   : > { %1413 = shalt.err (!%p1410_p9)
}
 0x2df   : > { %s1414_s12 = scalar_lea.hbm %s1886_s11, 2048  ;;  %s1418_s18 = scalar_lea.hbm %s2018_s24, 4096 }
 0x2e0   : > { %p1415_p1 = scmp.ne.s32.totalorder %s1886_s11, %s1414_s12  ;;  %p1419_p10 = scmp.lt.u32.totalorder %s1886_s11, %s2018_s24 }
 0x2e1   : > { %p1420_p11 = scmp.lt.u32.totalorder %s1418_s18, %s1414_s12  ;;  %p1422_p12 = scmp.lt.u32.totalorder %s1414_s12, %s1886_s11 }
 0x2e2   : > { %p1416_p5 = pnand %p1415_p1, %p2019_p0 }
 0x2e3   : > { %p1421_p13 = por %p1420_p11, %p1419_p10 }
 0x2e4   : > { %p1417_p3 = pneg %p1416_p5 }
 0x2e5   : > { %p1423_p4 = por %p1422_p12, %p1421_p13 }
 0x2e7   : > { %p1424_p6 = pnand %p1423_p4, %p1417_p3 }
 0x2e9   : > { %1427 = shalt.err (!%p1424_p6)
}
 0x2ea   : > { %s1540_s6 = smov 128   ;;  %s1541_s13 = smov 8  }
 0x2eb   : > { %1145 = dma.vmem_to_hbm [thread:$0]  (%p2019_p0), %s1889_s28, 2048, %s1886_s11, %s1893_s23, %s1540_s6, %s1540_s6, %s1541_s13  }
 0x2ec PF: > { %s2020_s16 = sld [smem:[#allocation19_spill]]  ;;  %s2021_s7 = sld [smem:[#allocation24_spill]] }
 0x2ed   : > { %p1169_p8 = scmp.ge.s32.totalorder %s1528_s20, 2 }
 0x2f2   : > { %s857_s21 = sand.u32 1, %s2020_s16   ;;  %p2022_p2 = scmp.ne.s32.totalorder %s2021_s7, 0 }
 0x2f3   : > { %s858_s29 = scalar_lea.sflag [#allocation8], %s857_s21 }
 0x2f4   : > { %p1161_p7 = pnand %p1169_p8, %p2022_p2 }
 0x2f6   : > { %1483 = dma.done.wait (!%p1161_p7), %s858_s29, 2048  }
 0x2f7   : > { %1485 = vsyncadd (!%p1161_p7), %s858_s29, 4294965248  ;;  %s31_s20 = sadd.s32 1, %s1528_s20   ;;  %s2023_s10 = sld [smem:[#allocation20_spill]] }
 0x2f8   : > { %p28_p9 = scmp.ge.s32.totalorder %s31_s20, 6   ;;  %s2024_s12 = sld [smem:[#allocation27_spill]] }
 0x2f9   : > { %s2025_s16 = sld [smem:[#allocation22_spill]]  ;;  %s2026_s18 = sld [smem:[#allocation25_spill]] }
 0x2fa   : > { %s2027_s5 = sld [smem:[#allocation26_spill]]  ;;  %s2028_s0 = smov %s1492_s1 }
 0x2fb   : > { %s2030_s13 = smov %s1504_s14  ;;  %s2031_s14 = smov %s1508_s15 }
 0x2fc   : > { %s2032_s15 = smov %s1782_s17  ;;  %s2033_s17 = smov %s1524_s19 }
 0x2fd   : > { %s2029_s1 = smov %s2023_s10  ;;  %30 = sbr.rel (!%p28_p9) target bundleno = 33 (0x21), region = 102 }
 0x300   : > { %s2034_s19 = smov %s2027_s5 }
 0x304   :  { %863 = vsyncpa [#allocation7], 1 }
 0x305   :  { %865 = vsyncpa [#allocation7 + $0x1], 1 }
 0x306   :  { %866 = vsyncpa [#allocation10], 1 }
 0x307   :  { %867 = vsyncpa [#allocation8], 1 }
 0x308   :  { %869 = vsyncpa [#allocation8 + $0x1], 1 }

</bundles_post_ra>
